<compile_context>
chip_gen: v7x
topology: tpu7x:2x2x1
jax: 0.10.0
libtpu: 0.0.40
codegen_flags: <defaults>
</compile_context>

<pallas_src>
import jax
import jax.numpy as jnp
from jax.experimental import pallas as pl
from jax.experimental.pallas import tpu as pltpu

_LANE = 512                            # preferred lane-dense width (multiple of 128)
_FUSED_BYTES_LIMIT = 4 * 1024 * 1024   # all-4-in-one-call path if inputs fit this


def _sublane_multiple(dtype) -> int:
    """Sublane packing multiple: 8 for 32-bit, 16 for 16-bit, 32 for 8-bit."""
    bits = jnp.dtype(dtype).itemsize * 8
    return max(8, 256 // bits)


def _tile_bytes_budget() -> int:
    """Per-buffer VMEM budget for the tiled path so in+out, double-buffered,
    stays well inside the scoped-VMEM default of the current generation."""
    try:
        kind = jax.devices()[0].device_kind.lower()
    except Exception:
        kind = ""
    if "v5 lite" in kind or "v5e" in kind:
        return 2 * 1024 * 1024         # ~8 MiB total footprint (v5e: 16 MiB scoped)
    return 4 * 1024 * 1024             # ~16 MiB total footprint (v6e/v7x: 32 MiB)


def _lane_dense_view(t):
    """Free (contiguous) 2-D reshape, lane-dense when the element count allows."""
    total = t.size
    for lane in (_LANE, 256, 128):
        if total % lane == 0:
            return t.reshape(total // lane, lane)
    # Awkward sizes: still a free reshape; full-extent last dim is always a
    # legal block dim even if it is not a multiple of 128 (sub-optimal, tiny).
    if t.ndim >= 2:
        return t.reshape(-1, t.shape[-1])
    return t.reshape(1, total)


def _scale_relu_kernel(x_ref, o_ref):
    v = x_ref[...] * 2 - 1               # weak-typed literals: no dtype promotion
    o_ref[...] = jnp.maximum(v, 0).astype(o_ref.dtype)


def _fused_scale_relu_kernel(*refs):
    n = len(refs) // 2
    for x_ref, o_ref in zip(refs[:n], refs[n:]):
        v = x_ref[...] * 2 - 1
        o_ref[...] = jnp.maximum(v, 0).astype(o_ref.dtype)


def _fused_call(views):
    """One pallas_call, 4 in refs + 4 out refs, full-array blocks (small case)."""
    specs = [pl.BlockSpec(v.shape, lambda i: (0, 0)) for v in views]
    total_elems = sum(v.size for v in views)
    total_bytes = sum(v.size * jnp.dtype(v.dtype).itemsize for v in views)
    return pl.pallas_call(
        _fused_scale_relu_kernel,
        grid=(1,),
        in_specs=specs,
        out_specs=tuple(specs),
        out_shape=tuple(jax.ShapeDtypeStruct(v.shape, v.dtype) for v in views),
        compiler_params=pltpu.CompilerParams(
            dimension_semantics=("arbitrary",)),
        cost_estimate=pl.CostEstimate(
            flops=3 * total_elems,
            transcendentals=0,
            bytes_accessed=2 * total_bytes),
    )(*views)


def _tiled_call(v2d):
    """Per-tensor row-tiled streaming call (large case)."""
    rows, lane = v2d.shape
    dtype = v2d.dtype
    itemsize = jnp.dtype(dtype).itemsize
    sub = _sublane_multiple(dtype)
    budget_rows = max(sub, (_tile_bytes_budget() // (lane * itemsize)) // sub * sub)
    tile_rows = rows if rows <= budget_rows else budget_rows
    grid = (pl.cdiv(rows, tile_rows),)   # partial last block handled by masking
    block = pl.BlockSpec((tile_rows, lane), lambda i: (i, 0))
    return pl.pallas_call(
        _scale_relu_kernel,
        grid=grid,
        in_specs=[block],
        out_specs=block,
        out_shape=jax.ShapeDtypeStruct((rows, lane), dtype),
        compiler_params=pltpu.CompilerParams(
            dimension_semantics=("parallel",)),
        cost_estimate=pl.CostEstimate(
            flops=3 * rows * lane,
            transcendentals=0,
            bytes_accessed=2 * rows * lane * itemsize),
    )(v2d)


def _scale_relu(x, y, z, w):
    """relu(t * 2 - 1) for each of x, y, z, w (tuple out, shapes preserved)."""
    inputs = (x, y, z, w)
    views = tuple(_lane_dense_view(t) for t in inputs)
    total_bytes = sum(v.size * jnp.dtype(v.dtype).itemsize for v in views)
    if total_bytes <= _FUSED_BYTES_LIMIT:
        outs = _fused_call(views)
    else:
        outs = tuple(_tiled_call(v) for v in views)
    return tuple(o.reshape(t.shape) for o, t in zip(outs, inputs))


scale_relu = jax.jit(_scale_relu)


def _reference(x, y, z, w):
    f = lambda t: jnp.maximum(t * 2 - 1, 0)
    return f(x), f(y), f(z), f(w)


if __name__ == "__main__":
    key = jax.random.PRNGKey(0)
    k1, k2, k3, k4 = jax.random.split(key, 4)

    # Small shapes mirroring the original test's rank pattern (2-D .. 5-D).
    x = jax.random.uniform(k1, (1, 16), dtype=jnp.float32)
    y = jax.random.uniform(k2, (2, 8, 16), dtype=jnp.float32)
    z = jax.random.uniform(k3, (2, 4, 16, 16), dtype=jnp.float32)
    w = jax.random.uniform(k4, (2, 2, 4, 16, 16), dtype=jnp.float32)

    outs = jax.block_until_ready(scale_relu(x, y, z, w))

    refs = _reference(x, y, z, w)
    for o, r in zip(outs, refs):
        assert o.shape == r.shape and o.dtype == r.dtype
        assert jnp.allclose(o, r, atol=1e-6), "mismatch vs reference"

    print("KERNEL_OK")
</pallas_src>

<mosaic_0001>
module attributes {stable_mosaic.version = 11 : i64} {
  func.func @_fused_scale_relu_kernel(%arg0: i32, %arg1: memref<1x16xf32, #tpu.memory_space<vmem>>, %arg2: memref<1x256xf32, #tpu.memory_space<vmem>>, %arg3: memref<4x512xf32, #tpu.memory_space<vmem>>, %arg4: memref<8x512xf32, #tpu.memory_space<vmem>>, %arg5: memref<1x16xf32, #tpu.memory_space<vmem>>, %arg6: memref<1x256xf32, #tpu.memory_space<vmem>>, %arg7: memref<4x512xf32, #tpu.memory_space<vmem>>, %arg8: memref<8x512xf32, #tpu.memory_space<vmem>>) attributes {dimension_semantics = [#tpu.dimension_semantics<arbitrary>], iteration_bounds = array<i64: 1>, scalar_prefetch = 0 : i64, scratch_operands = 0 : i64, tpu.core_type = #tpu.core_type<tc>, window_params = [{pipeline_mode = #tpu.pipeline_mode<synchronous>, transform_indices = @transform_0, window_bounds = array<i64: 1, 16>}, {pipeline_mode = #tpu.pipeline_mode<synchronous>, transform_indices = @transform_1, window_bounds = array<i64: 1, 256>}, {pipeline_mode = #tpu.pipeline_mode<synchronous>, transform_indices = @transform_2, window_bounds = array<i64: 4, 512>}, {pipeline_mode = #tpu.pipeline_mode<synchronous>, transform_indices = @transform_3, window_bounds = array<i64: 8, 512>}, {pipeline_mode = #tpu.pipeline_mode<synchronous>, transform_indices = @transform_4, window_bounds = array<i64: 1, 16>}, {pipeline_mode = #tpu.pipeline_mode<synchronous>, transform_indices = @transform_5, window_bounds = array<i64: 1, 256>}, {pipeline_mode = #tpu.pipeline_mode<synchronous>, transform_indices = @transform_6, window_bounds = array<i64: 4, 512>}, {pipeline_mode = #tpu.pipeline_mode<synchronous>, transform_indices = @transform_7, window_bounds = array<i64: 8, 512>}]} {
    %c0 = arith.constant 0 : index
    %c0_0 = arith.constant 0 : index
    %0 = vector.load %arg1[%c0, %c0_0] : memref<1x16xf32, #tpu.memory_space<vmem>>, vector<1x16xf32>
    %cst = arith.constant 2.000000e+00 : f32
    %1 = vector.broadcast %cst : f32 to vector<1x16xf32>
    %2 = arith.mulf %0, %1 : vector<1x16xf32>
    %cst_1 = arith.constant 1.000000e+00 : f32
    %3 = vector.broadcast %cst_1 : f32 to vector<1x16xf32>
    %4 = arith.subf %2, %3 : vector<1x16xf32>
    %cst_2 = arith.constant 0.000000e+00 : f32
    %5 = vector.broadcast %cst_2 : f32 to vector<1x16xf32>
    %6 = arith.maximumf %4, %5 : vector<1x16xf32>
    %c0_3 = arith.constant 0 : index
    %c0_4 = arith.constant 0 : index
    %7 = vector.load %arg5[%c0_3, %c0_4] : memref<1x16xf32, #tpu.memory_space<vmem>>, vector<1x16xf32>
    tpu.vector_store %arg5[%c0_3, %c0_4], %6 {strides = array<i32>} : memref<1x16xf32, #tpu.memory_space<vmem>>, vector<1x16xf32>,
    %c0_5 = arith.constant 0 : index
    %c0_6 = arith.constant 0 : index
    %8 = vector.load %arg2[%c0_5, %c0_6] : memref<1x256xf32, #tpu.memory_space<vmem>>, vector<1x256xf32>
    %cst_7 = arith.constant 2.000000e+00 : f32
    %9 = vector.broadcast %cst_7 : f32 to vector<1x256xf32>
    %10 = arith.mulf %8, %9 : vector<1x256xf32>
    %cst_8 = arith.constant 1.000000e+00 : f32
    %11 = vector.broadcast %cst_8 : f32 to vector<1x256xf32>
    %12 = arith.subf %10, %11 : vector<1x256xf32>
    %cst_9 = arith.constant 0.000000e+00 : f32
    %13 = vector.broadcast %cst_9 : f32 to vector<1x256xf32>
    %14 = arith.maximumf %12, %13 : vector<1x256xf32>
    %c0_10 = arith.constant 0 : index
    %c0_11 = arith.constant 0 : index
    %15 = vector.load %arg6[%c0_10, %c0_11] : memref<1x256xf32, #tpu.memory_space<vmem>>, vector<1x256xf32>
    tpu.vector_store %arg6[%c0_10, %c0_11], %14 {strides = array<i32>} : memref<1x256xf32, #tpu.memory_space<vmem>>, vector<1x256xf32>,
    %c0_12 = arith.constant 0 : index
    %c0_13 = arith.constant 0 : index
    %16 = vector.load %arg3[%c0_12, %c0_13] : memref<4x512xf32, #tpu.memory_space<vmem>>, vector<4x512xf32>
    %cst_14 = arith.constant 2.000000e+00 : f32
    %17 = vector.broadcast %cst_14 : f32 to vector<4x512xf32>
    %18 = arith.mulf %16, %17 : vector<4x512xf32>
    %cst_15 = arith.constant 1.000000e+00 : f32
    %19 = vector.broadcast %cst_15 : f32 to vector<4x512xf32>
    %20 = arith.subf %18, %19 : vector<4x512xf32>
    %cst_16 = arith.constant 0.000000e+00 : f32
    %21 = vector.broadcast %cst_16 : f32 to vector<4x512xf32>
    %22 = arith.maximumf %20, %21 : vector<4x512xf32>
    %c0_17 = arith.constant 0 : index
    %c0_18 = arith.constant 0 : index
    %23 = vector.load %arg7[%c0_17, %c0_18] : memref<4x512xf32, #tpu.memory_space<vmem>>, vector<4x512xf32>
    tpu.vector_store %arg7[%c0_17, %c0_18], %22 {strides = array<i32>} : memref<4x512xf32, #tpu.memory_space<vmem>>, vector<4x512xf32>,
    %c0_19 = arith.constant 0 : index
    %c0_20 = arith.constant 0 : index
    %24 = vector.load %arg4[%c0_19, %c0_20] : memref<8x512xf32, #tpu.memory_space<vmem>>, vector<8x512xf32>
    %cst_21 = arith.constant 2.000000e+00 : f32
    %25 = vector.broadcast %cst_21 : f32 to vector<8x512xf32>
    %26 = arith.mulf %24, %25 : vector<8x512xf32>
    %cst_22 = arith.constant 1.000000e+00 : f32
    %27 = vector.broadcast %cst_22 : f32 to vector<8x512xf32>
    %28 = arith.subf %26, %27 : vector<8x512xf32>
    %cst_23 = arith.constant 0.000000e+00 : f32
    %29 = vector.broadcast %cst_23 : f32 to vector<8x512xf32>
    %30 = arith.maximumf %28, %29 : vector<8x512xf32>
    %c0_24 = arith.constant 0 : index
    %c0_25 = arith.constant 0 : index
    %31 = vector.load %arg8[%c0_24, %c0_25] : memref<8x512xf32, #tpu.memory_space<vmem>>, vector<8x512xf32>
    tpu.vector_store %arg8[%c0_24, %c0_25], %30 {strides = array<i32>} : memref<8x512xf32, #tpu.memory_space<vmem>>, vector<8x512xf32>,
    return
  }
  func.func @transform_0(%arg0: i32) -> (i32, i32) {
    %c0_i32 = arith.constant 0 : i32
    %c0_i32_0 = arith.constant 0 : i32
    %c0_i32_1 = arith.constant 0 : i32
    return %c0_i32, %c0_i32_0 : i32, i32
  }
  func.func @transform_1(%arg0: i32) -> (i32, i32) {
    %c0_i32 = arith.constant 0 : i32
    %c0_i32_0 = arith.constant 0 : i32
    %c0_i32_1 = arith.constant 0 : i32
    return %c0_i32, %c0_i32_0 : i32, i32
  }
  func.func @transform_2(%arg0: i32) -> (i32, i32) {
    %c0_i32 = arith.constant 0 : i32
    %c0_i32_0 = arith.constant 0 : i32
    %c0_i32_1 = arith.constant 0 : i32
    return %c0_i32, %c0_i32_0 : i32, i32
  }
  func.func @transform_3(%arg0: i32) -> (i32, i32) {
    %c0_i32 = arith.constant 0 : i32
    %c0_i32_0 = arith.constant 0 : i32
    %c0_i32_1 = arith.constant 0 : i32
    return %c0_i32, %c0_i32_0 : i32, i32
  }
  func.func @transform_4(%arg0: i32) -> (i32, i32) {
    %c0_i32 = arith.constant 0 : i32
    %c0_i32_0 = arith.constant 0 : i32
    %c0_i32_1 = arith.constant 0 : i32
    return %c0_i32, %c0_i32_0 : i32, i32
  }
  func.func @transform_5(%arg0: i32) -> (i32, i32) {
    %c0_i32 = arith.constant 0 : i32
    %c0_i32_0 = arith.constant 0 : i32
    %c0_i32_1 = arith.constant 0 : i32
    return %c0_i32, %c0_i32_0 : i32, i32
  }
  func.func @transform_6(%arg0: i32) -> (i32, i32) {
    %c0_i32 = arith.constant 0 : i32
    %c0_i32_0 = arith.constant 0 : i32
    %c0_i32_1 = arith.constant 0 : i32
    return %c0_i32, %c0_i32_0 : i32, i32
  }
  func.func @transform_7(%arg0: i32) -> (i32, i32) {
    %c0_i32 = arith.constant 0 : i32
    %c0_i32_0 = arith.constant 0 : i32
    %c0_i32_1 = arith.constant 0 : i32
    return %c0_i32, %c0_i32_0 : i32, i32
  }
}

</mosaic_0001>

<bundles_post_ra>
// kernel: _scale_relu.1
= control target key start
LH: loop header
LB: loop body
LE: loop exit
PB: predicated region body
PF: predicated region fallthrough
CT: control target
= control target key end

     0   :  { %vm26_vm0 = vcmask 122880   ;;  %v32_v2 = vlaneseq  ;;  %s231_s0 = inlined_call_operand.vmem [shape: f32[1,16], index: 0, kind: input, shape index: {}]   ;;  %s232_s1 = inlined_call_operand.vmem [shape: f32[1,256], index: 1, kind: input, shape index: {}]   ;;  %s233_s2 = inlined_call_operand.vmem [shape: f32[4,512], index: 2, kind: input, shape index: {}]   ;;  %s234_s3 = inlined_call_operand.vmem [shape: f32[8,512], index: 3, kind: input, shape index: {}]   ;;  %s235_s4 = inlined_call_operand.hbm [shape: f32[1,16], index: 4, kind: output, shape index: {0}]   ;;  %s236_s5 = inlined_call_operand.vmem [shape: f32[1,256], index: 5, kind: output, shape index: {1}]   ;;  %s237_s6 = inlined_call_operand.vmem [shape: f32[4,512], index: 6, kind: output, shape index: {2}]   ;;  %s238_s7 = inlined_call_operand.vmem [shape: f32[8,512], index: 7, kind: output, shape index: {3}]  }
   0x1   :  { %v22_v0 = vld [vmem:[%s231_s0] sm:$0x1]  ;;  %v38_v7 = vld [vmem:[%s233_s2 + $0x8] sm:$0xff]  ;;  %v49_v14 = vld [vmem:[%s234_s3 + $0x10] sm:$0xff] }
   0x2   :  { %v28_v1 = vld [vmem:[%s232_s1] sm:$0x3]  ;;  %v23_v4 = vmul.f32 2.0, %v22_v0  ;;  %v48_v9 = vld [vmem:[%s234_s3 + $0x8] sm:$0xff]  ;;  %vm185_vm1 = vcmp.lt.s32.totalorder %v32_v2, 256  ;;  %v40_v11 = vmul.f32 2.0, %v38_v7 }
   0x3   :  { %v37_v3 = vld [vmem:[%s233_s2] sm:$0xff]  ;;  %v29_v5 = vmul.f32 2.0, %v28_v1  ;;  %v52_v13 = vmul.f32 2.0, %v48_v9  ;;  %v50_v15 = vld [vmem:[%s234_s3 + $0x18] sm:$0xff]  ;;  %v53_v19 = vmul.f32 2.0, %v49_v14 }
   0x4   :  { %v39_v6 = vmul.f32 2.0, %v37_v3  ;;  %v47_v8 = vld [vmem:[%s234_s3] sm:$0xff]  ;;  %v93_v16 = vadd.f32 -1.0, %v23_v4 }
   0x5   :  { %v51_v12 = vmul.f32 2.0, %v47_v8  ;;  %v94_v17 = vadd.f32 -1.0, %v29_v5 }
   0x6   :  { %v95_v18 = vadd.f32 -1.0, %v39_v6 }
   0x7   :  { %13 = vsyncpa [#allocation3], 0  ;;  %v96_v20 = vadd.f32 -1.0, %v40_v11  ;;  %v97_v21 = vadd.f32 -1.0, %v51_v12  ;;  %v98_v22 = vadd.f32 -1.0, %v52_v13  ;;  %v54_v23 = vmul.f32 2.0, %v50_v15 }
   0x8   :  { %v25_v24 = vmax.f32 %v93_v16, 0.0  ;;  %v31_v25 = vmax.f32 %v94_v17, 0.0  ;;  %v43_v26 = vmax.f32 %v95_v18, 0.0  ;;  %v99_v27 = vadd.f32 -1.0, %v53_v19  ;;  %s126_s14 = smov [#allocation2]  }
   0x9   :  { %s73_s15 = sshll.u32 %s126_s14, 4  ;;  %v44_v28 = vmax.f32 %v96_v20, 0.0  ;;  %v59_v29 = vmax.f32 %v97_v21, 0.0  ;;  %v60_v30 = vmax.f32 %v98_v22, 0.0  ;;  %v100_v31 = vadd.f32 -1.0, %v54_v23  ;;  %s74_s15 = int_to_ptr.vmem [resolvable:$true] %s73_s15 }
   0xa   :  { %27 = vst.msk [vmem:[#allocation2] sm:$0x1] %vm26_vm0, %v25_v24  ;;  %45 = vst [vmem:[%s237_s6] sm:$0xff] %v43_v26  ;;  %v61_v32 = vmax.f32 %v99_v27, 0.0  ;;  %s102_s25 = scalar_lea.vmem %s74_s15, 16  ;;  %p107_p1 = scmp.lt.s32.totalorder %s74_s15, %s74_s15 }
   0xb   :  { %36 = vst.msk [vmem:[%s236_s5] sm:$0x3] %vm185_vm1, %v31_v25  ;;  %46 = vst [vmem:[%s237_s6 + $0x8] sm:$0xff] %v44_v28  ;;  %v62_v33 = vmax.f32 %v100_v31, 0.0  ;;  %p103_p0 = scmp.ne.s32.totalorder %s74_s15, %s102_s25  ;;  %s106_s5 = scalar_lea.vmem %s74_s15, 32 }
   0xc   :  { %63 = vst [vmem:[%s238_s7] sm:$0xff] %v59_v29  ;;  %64 = vst [vmem:[%s238_s7 + $0x8] sm:$0xff] %v60_v30  ;;  %p108_p2 = scmp.lt.s32.totalorder %s106_s5, %s102_s25 }
   0xe   :  { %p109_p3 = por %p108_p2, %p107_p1 }
  0x10   :  { %p110_p4 = pnand %p109_p3, %p103_p0 }
  0x12   :  { %113 = shalt.err (!%p110_p4)
}
  0x13   :  { %s114_s6 = scalar_lea.hbm %s235_s4, 16 }
  0x14   :  { %p115_p5 = scmp.ne.s32.totalorder %s235_s4, %s114_s6  ;;  %p118_p6 = scmp.lt.u32.totalorder %s114_s6, %s235_s4 }
  0x16   :  { %p120_p7 = pnand %p118_p6, %p115_p5 }
  0x18   :  { %123 = shalt.err (!%p120_p7)
}
  0x19   :  { %76 = dma.vmem_to_hbm [thread:$0]  %s74_s15, 16, %s235_s4, [#allocation3]   ;;  %65 = vst [vmem:[%s238_s7 + $0x10] sm:$0xff] %v61_v32  ;;  %66 = vst [vmem:[%s238_s7 + $0x18] sm:$0xff] %v62_v33 }
  0x1a   :  { %124 = dma.done.wait [#allocation3], 16  }
  0x1b   :  { %125 = vsyncadd [#allocation3], 4294967280 }
  0x1c   :  { %92 = vsyncpa [#allocation3], 1 }

</bundles_post_ra>
